<compile_context>
chip_gen: v7x
topology: tpu7x:2x2x1
jax: 0.10.0
libtpu: 0.0.40
codegen_flags: <defaults>
</compile_context>

<pallas_src>
import functools

import jax
import jax.numpy as jnp
from jax.experimental import pallas as pl
from jax.experimental.pallas import tpu as pltpu

HIDDEN = 64
LEAKY_SLOPE = 0.01          # nn.LeakyReLU default negative_slope
DEFAULT_TILE_B = 2048       # fits comfortably in scoped VMEM on v5e/v6e/v7x


def _leaky_relu(x):
    return jnp.where(x >= 0, x, LEAKY_SLOPE * x)


def dqn_kernel(x_ref, w1_ref, b1_ref, w2_ref, b2_ref, w3_ref, b3_ref, o_ref):
    # x_ref: (TILE_B, states) bf16; w*: bf16; b*: f32 (1, out); o_ref: (TILE_B, outputs) f32.
    x = x_ref[...]

    h1 = jnp.dot(x, w1_ref[...], preferred_element_type=jnp.float32) + b1_ref[...]
    h1 = _leaky_relu(h1)

    h2 = jnp.dot(h1.astype(jnp.bfloat16), w2_ref[...],
                 preferred_element_type=jnp.float32) + b2_ref[...]
    h2 = _leaky_relu(h2)

    out = jnp.dot(h2.astype(jnp.bfloat16), w3_ref[...],
                  preferred_element_type=jnp.float32) + b3_ref[...]
    o_ref[...] = out.astype(o_ref.dtype)


@functools.partial(jax.jit, static_argnames=("tile_b",))
def dqn_forward(x, params, *, tile_b=DEFAULT_TILE_B):
    """x: (..., states). Returns (B, outputs) f32 where B = prod(leading dims)."""
    w1, b1, w2, b2, w3, b3 = params
    states = w1.shape[0]
    outputs = w3.shape[1]

    # x.view(-1, states); bf16 input stream halves the dominant HBM read traffic.
    x2d = x.reshape(-1, states).astype(jnp.bfloat16)
    B = x2d.shape[0]

    # Batch tile: multiple of 8 (sublane granularity), never larger than the padded batch.
    tb = min(tile_b, ((B + 7) // 8) * 8)
    nb = pl.cdiv(B, tb)
    B_pad = nb * tb
    if B_pad != B:
        # Ragged tail: pad with zero rows, slice the output afterwards.
        x2d = jnp.pad(x2d, ((0, B_pad - B), (0, 0)))

    # Grid-varying spec for the activation stream; constant index_maps pin params in VMEM.
    act_spec = lambda f: pl.BlockSpec((tb, f), lambda i: (i, 0))
    par_spec = lambda shape: pl.BlockSpec(shape, lambda i: (0, 0))

    flops = 2 * B_pad * (states * HIDDEN + HIDDEN * HIDDEN + HIDDEN * outputs)
    param_bytes = (w1.size + w2.size + w3.size) * 2 + (b1.size + b2.size + b3.size) * 4
    bytes_accessed = B_pad * states * 2 + B_pad * outputs * 4 + param_bytes

    out = pl.pallas_call(
        dqn_kernel,
        out_shape=jax.ShapeDtypeStruct((B_pad, outputs), jnp.float32),
        grid_spec=pltpu.PrefetchScalarGridSpec(
            num_scalar_prefetch=0,
            grid=(nb,),
            in_specs=[
                act_spec(states),
                par_spec((states, HIDDEN)), par_spec((1, HIDDEN)),
                par_spec((HIDDEN, HIDDEN)), par_spec((1, HIDDEN)),
                par_spec((HIDDEN, outputs)), par_spec((1, outputs)),
            ],
            out_specs=act_spec(outputs),
        ),
        compiler_params=pltpu.CompilerParams(
            dimension_semantics=("parallel",),        # megacore-shard batch tiles (v7x)
            vmem_limit_bytes=32 * 1024 * 1024,        # explicit, safe on v5e/v6e/v7x
        ),
        cost_estimate=pl.CostEstimate(
            flops=flops, transcendentals=0, bytes_accessed=bytes_accessed),
    )(x2d, w1, b1, w2, b2, w3, b3)

    return out[:B]


def init_params(key, states, outputs):
    """Deterministic init mimicking PyTorch Linear default U(-1/sqrt(fan_in), 1/sqrt(fan_in)).
    Weights stored bf16 (MXU-native) with shape (in, out); biases f32 (1, out)."""
    ks = jax.random.split(key, 6)

    def linear(kw, kb, fan_in, fan_out):
        bound = 1.0 / jnp.sqrt(fan_in)
        w = jax.random.uniform(kw, (fan_in, fan_out), jnp.float32, -bound, bound)
        b = jax.random.uniform(kb, (1, fan_out), jnp.float32, -bound, bound)
        return w.astype(jnp.bfloat16), b

    w1, b1 = linear(ks[0], ks[1], states, HIDDEN)
    w2, b2 = linear(ks[2], ks[3], HIDDEN, HIDDEN)
    w3, b3 = linear(ks[4], ks[5], HIDDEN, outputs)
    return (w1, b1, w2, b2, w3, b3)


def reference_forward(x, params):
    """Pure-JAX reference mirroring the kernel's bf16-operand / f32-accumulate numerics."""
    w1, b1, w2, b2, w3, b3 = params
    f32 = jnp.float32
    x2d = x.reshape(-1, w1.shape[0]).astype(jnp.bfloat16).astype(f32)
    h1 = _leaky_relu(x2d @ w1.astype(f32) + b1)
    h1 = h1.astype(jnp.bfloat16).astype(f32)
    h2 = _leaky_relu(h1 @ w2.astype(f32) + b2)
    h2 = h2.astype(jnp.bfloat16).astype(f32)
    return h2 @ w3.astype(f32) + b3


if __name__ == "__main__":
    states = 16   # feature count
    outputs = 4   # action count
    batch = 8

    key = jax.random.PRNGKey(0)
    k_x, k_p = jax.random.split(key)
    x = jax.random.normal(k_x, (batch, states), jnp.float32)
    params = init_params(k_p, states, outputs)

    out = jax.block_until_ready(dqn_forward(x, params))
    ref = reference_forward(x, params)
    assert out.shape == (batch, outputs)
    assert jnp.allclose(out, ref, atol=1e-3, rtol=1e-3), "mismatch vs JAX reference"

    # Ragged, multi-tile batch exercises tail padding + the batch-tiled pipeline.
    x_big = jax.random.normal(k_x, (3000, states), jnp.float32)
    out_big = jax.block_until_ready(dqn_forward(x_big, params, tile_b=1024))
    ref_big = reference_forward(x_big, params)
    assert out_big.shape == (3000, outputs)
    assert jnp.allclose(out_big, ref_big, atol=1e-3, rtol=1e-3), "mismatch (tiled/ragged batch)"

    print("KERNEL_OK")
</pallas_src>

<mosaic_0001>
module attributes {stable_mosaic.version = 11 : i64} {
  func.func @dqn_kernel(%arg0: i32, %arg1: memref<8x16xbf16, #tpu.memory_space<vmem>>, %arg2: memref<16x64xbf16, #tpu.memory_space<vmem>>, %arg3: memref<1x64xf32, #tpu.memory_space<vmem>>, %arg4: memref<64x64xbf16, #tpu.memory_space<vmem>>, %arg5: memref<1x64xf32, #tpu.memory_space<vmem>>, %arg6: memref<64x4xbf16, #tpu.memory_space<vmem>>, %arg7: memref<1x4xf32, #tpu.memory_space<vmem>>, %arg8: memref<8x4xf32, #tpu.memory_space<vmem>>) attributes {dimension_semantics = [#tpu.dimension_semantics<parallel>], iteration_bounds = array<i64: 1>, scalar_prefetch = 0 : i64, scratch_operands = 0 : i64, tpu.core_type = #tpu.core_type<tc>, window_params = [{transform_indices = @transform_0, window_bounds = array<i64: 8, 16>}, {pipeline_mode = #tpu.pipeline_mode<synchronous>, transform_indices = @transform_1, window_bounds = array<i64: 16, 64>}, {pipeline_mode = #tpu.pipeline_mode<synchronous>, transform_indices = @transform_2, window_bounds = array<i64: 1, 64>}, {pipeline_mode = #tpu.pipeline_mode<synchronous>, transform_indices = @transform_3, window_bounds = array<i64: 64, 64>}, {pipeline_mode = #tpu.pipeline_mode<synchronous>, transform_indices = @transform_4, window_bounds = array<i64: 1, 64>}, {pipeline_mode = #tpu.pipeline_mode<synchronous>, transform_indices = @transform_5, window_bounds = array<i64: 64, 4>}, {pipeline_mode = #tpu.pipeline_mode<synchronous>, transform_indices = @transform_6, window_bounds = array<i64: 1, 4>}, {transform_indices = @transform_7, window_bounds = array<i64: 8, 4>}]} {
    %c0 = arith.constant 0 : index
    %c0_0 = arith.constant 0 : index
    %0 = vector.load %arg1[%c0, %c0_0] : memref<8x16xbf16, #tpu.memory_space<vmem>>, vector<8x16xbf16>
    %c0_1 = arith.constant 0 : index
    %c0_2 = arith.constant 0 : index
    %1 = vector.load %arg2[%c0_1, %c0_2] : memref<16x64xbf16, #tpu.memory_space<vmem>>, vector<16x64xbf16>
    %cst = arith.constant dense<0.000000e+00> : vector<8x64xf32>
    %2 = tpu.matmul %0, %1, %cst {dimension_numbers = #tpu.dot_dimension_numbers<[1], [0], [0], [1], [0, 0, 1, 1], [], []>} : vector<8x16xbf16>, vector<16x64xbf16>, vector<8x64xf32> -> vector<8x64xf32>
    %c0_3 = arith.constant 0 : index
    %c0_4 = arith.constant 0 : index
    %3 = vector.load %arg3[%c0_3, %c0_4] : memref<1x64xf32, #tpu.memory_space<vmem>>, vector<1x64xf32>
    %4 = vector.broadcast %3 : vector<1x64xf32> to vector<8x64xf32>
    %5 = arith.addf %2, %4 : vector<8x64xf32>
    %cst_5 = arith.constant 0.000000e+00 : f32
    %6 = vector.broadcast %cst_5 : f32 to vector<8x64xf32>
    %7 = arith.cmpf oge, %5, %6 : vector<8x64xf32>
    %cst_6 = arith.constant 0.00999999977 : f32
    %8 = vector.broadcast %cst_6 : f32 to vector<8x64xf32>
    %9 = arith.mulf %8, %5 : vector<8x64xf32>
    %10 = arith.select %7, %5, %9 : vector<8x64xi1>, vector<8x64xf32>
    %11 = arith.truncf %10 : vector<8x64xf32> to vector<8x64xbf16>
    %c0_7 = arith.constant 0 : index
    %c0_8 = arith.constant 0 : index
    %12 = vector.load %arg4[%c0_7, %c0_8] : memref<64x64xbf16, #tpu.memory_space<vmem>>, vector<64x64xbf16>
    %cst_9 = arith.constant dense<0.000000e+00> : vector<8x64xf32>
    %13 = tpu.matmul %11, %12, %cst_9 {dimension_numbers = #tpu.dot_dimension_numbers<[1], [0], [0], [1], [0, 0, 1, 1], [], []>} : vector<8x64xbf16>, vector<64x64xbf16>, vector<8x64xf32> -> vector<8x64xf32>
    %c0_10 = arith.constant 0 : index
    %c0_11 = arith.constant 0 : index
    %14 = vector.load %arg5[%c0_10, %c0_11] : memref<1x64xf32, #tpu.memory_space<vmem>>, vector<1x64xf32>
    %15 = vector.broadcast %14 : vector<1x64xf32> to vector<8x64xf32>
    %16 = arith.addf %13, %15 : vector<8x64xf32>
    %cst_12 = arith.constant 0.000000e+00 : f32
    %17 = vector.broadcast %cst_12 : f32 to vector<8x64xf32>
    %18 = arith.cmpf oge, %16, %17 : vector<8x64xf32>
    %cst_13 = arith.constant 0.00999999977 : f32
    %19 = vector.broadcast %cst_13 : f32 to vector<8x64xf32>
    %20 = arith.mulf %19, %16 : vector<8x64xf32>
    %21 = arith.select %18, %16, %20 : vector<8x64xi1>, vector<8x64xf32>
    %22 = arith.truncf %21 : vector<8x64xf32> to vector<8x64xbf16>
    %c0_14 = arith.constant 0 : index
    %c0_15 = arith.constant 0 : index
    %23 = vector.load %arg6[%c0_14, %c0_15] : memref<64x4xbf16, #tpu.memory_space<vmem>>, vector<64x4xbf16>
    %cst_16 = arith.constant dense<0.000000e+00> : vector<8x4xf32>
    %24 = tpu.matmul %22, %23, %cst_16 {dimension_numbers = #tpu.dot_dimension_numbers<[1], [0], [0], [1], [0, 0, 1, 1], [], []>} : vector<8x64xbf16>, vector<64x4xbf16>, vector<8x4xf32> -> vector<8x4xf32>
    %c0_17 = arith.constant 0 : index
    %c0_18 = arith.constant 0 : index
    %25 = vector.load %arg7[%c0_17, %c0_18] : memref<1x4xf32, #tpu.memory_space<vmem>>, vector<1x4xf32>
    %26 = vector.broadcast %25 : vector<1x4xf32> to vector<8x4xf32>
    %27 = arith.addf %24, %26 : vector<8x4xf32>
    %c0_19 = arith.constant 0 : index
    %c0_20 = arith.constant 0 : index
    %28 = vector.load %arg8[%c0_19, %c0_20] : memref<8x4xf32, #tpu.memory_space<vmem>>, vector<8x4xf32>
    tpu.vector_store %arg8[%c0_19, %c0_20], %27 {strides = array<i32>} : memref<8x4xf32, #tpu.memory_space<vmem>>, vector<8x4xf32>,
    return
  }
  func.func @transform_0(%arg0: i32) -> (i32, i32) {
    %c0_i32 = arith.constant 0 : i32
    %c0_i32_0 = arith.constant 0 : i32
    return %arg0, %c0_i32 : i32, i32
  }
  func.func @transform_1(%arg0: i32) -> (i32, i32) {
    %c0_i32 = arith.constant 0 : i32
    %c0_i32_0 = arith.constant 0 : i32
    %c0_i32_1 = arith.constant 0 : i32
    return %c0_i32, %c0_i32_0 : i32, i32
  }
  func.func @transform_2(%arg0: i32) -> (i32, i32) {
    %c0_i32 = arith.constant 0 : i32
    %c0_i32_0 = arith.constant 0 : i32
    %c0_i32_1 = arith.constant 0 : i32
    return %c0_i32, %c0_i32_0 : i32, i32
  }
  func.func @transform_3(%arg0: i32) -> (i32, i32) {
    %c0_i32 = arith.constant 0 : i32
    %c0_i32_0 = arith.constant 0 : i32
    %c0_i32_1 = arith.constant 0 : i32
    return %c0_i32, %c0_i32_0 : i32, i32
  }
  func.func @transform_4(%arg0: i32) -> (i32, i32) {
    %c0_i32 = arith.constant 0 : i32
    %c0_i32_0 = arith.constant 0 : i32
    %c0_i32_1 = arith.constant 0 : i32
    return %c0_i32, %c0_i32_0 : i32, i32
  }
  func.func @transform_5(%arg0: i32) -> (i32, i32) {
    %c0_i32 = arith.constant 0 : i32
    %c0_i32_0 = arith.constant 0 : i32
    %c0_i32_1 = arith.constant 0 : i32
    return %c0_i32, %c0_i32_0 : i32, i32
  }
  func.func @transform_6(%arg0: i32) -> (i32, i32) {
    %c0_i32 = arith.constant 0 : i32
    %c0_i32_0 = arith.constant 0 : i32
    %c0_i32_1 = arith.constant 0 : i32
    return %c0_i32, %c0_i32_0 : i32, i32
  }
  func.func @transform_7(%arg0: i32) -> (i32, i32) {
    %c0_i32 = arith.constant 0 : i32
    %c0_i32_0 = arith.constant 0 : i32
    return %arg0, %c0_i32 : i32, i32
  }
}

</mosaic_0001>

<bundles_post_ra>
// kernel: dqn_forward.1
= control target key start
LH: loop header
LB: loop body
LE: loop exit
PB: predicated region body
PF: predicated region fallthrough
CT: control target
= control target key end

     0   :  { %v334_v0 = vmov 0.0   ;;  %vm335_vm0 = vmmov 0   ;;  %vm43_vm1 = vcmask 130048   ;;  %vm130_vm3 = vcmask 523264   ;;  %s420_s1 = inlined_call_operand.vmem [shape: bf16[16,64], index: 1, kind: input, shape index: {}]   ;;  %s421_s0 = inlined_call_operand.vmem [shape: bf16[8,16], index: 0, kind: input, shape index: {}]   ;;  %s422_s3 = inlined_call_operand.vmem [shape: bf16[64,64], index: 3, kind: input, shape index: {}]   ;;  %s423_s5 = inlined_call_operand.vmem [shape: bf16[64,4], index: 5, kind: input, shape index: {}]   ;;  %s424_s2 = inlined_call_operand.vmem [shape: f32[1,64], index: 2, kind: input, shape index: {}]   ;;  %s425_s4 = inlined_call_operand.vmem [shape: f32[1,64], index: 4, kind: input, shape index: {}]   ;;  %s426_s6 = inlined_call_operand.vmem [shape: f32[1,4], index: 6, kind: input, shape index: {}]   ;;  %s427_s7 = inlined_call_operand.vmem [shape: f32[8,4], index: 7, kind: output, shape index: {}]  }
   0x1   :  { %293 = vmatprep.subr.bf16.mxu0 %v334_v0  ;;  %v325_v1 = vld [vmem:[%s420_s1] sm:$0xff]   ;;  %295 = vmatprep.mubr.msk.bf16.mxu0 %vm335_vm0, %v334_v0  ;;  %v327_v4 = vld [vmem:[%s422_s3 + $0x8] sm:$0xff]   ;;  %v328_v5 = vld [vmem:[%s422_s3 + $0x10] sm:$0xff]   ;;  %vm260_vm5 = vcmask 31744  }
   0x2   :  { %v27_v2 = vld [vmem:[%s421_s0] sm:$0xf]  ;;  %299 = vmatprep.subr.bf16.mxu1 %v334_v0  ;;  %307 = vmatprep.mubr.msk.bf16.mxu1 %vm335_vm0, %v334_v0  ;;  %v329_v6 = vld [vmem:[%s422_s3 + $0x18] sm:$0xff]   ;;  %v331_v8 = vld [vmem:[%s423_s5 + $0x8] sm:$0xff]  }
   0x3   :  { %294 = vmatpush3.bf16.msra.mxu0 %v325_v1  ;;  %v326_v3 = vld [vmem:[%s422_s3] sm:$0xff]   ;;  %v332_v18 = vld [vmem:[%s423_s5 + $0x10] sm:$0xff]   ;;  %v333_v19 = vld [vmem:[%s423_s5 + $0x18] sm:$0xff]  }
   0x4   :  { %311 = vmatprep.subr.bf16.mxu0 %v334_v0  ;;  %300 = vmatpush3.bf16.msra.mxu1 %v326_v3  ;;  %v330_v7 = vld [vmem:[%s423_s5] sm:$0xff]  }
   0x5   :  { %301 = vmatprep.subr.bf16.mxu1 %v334_v0  ;;  %v266_v9 = vld [vmem:[%s424_s2] ss:$0 sm:$0xff] }
   0x6   :  { %296 = vmatmul.mubr.msk.bf16.vlgmr.msra.gmra.mrb[0].mxu0 %vm43_vm1, %v27_v2  ;;  %v269_v20 = vld [vmem:[%s425_s4] ss:$0 sm:$0xff] }
   0x7   :  { %319 = vmatprep.mubr.msk.bf16.mxu0 %vm335_vm0, %v334_v0  ;;  %312 = vmatpush3.bf16.msra.mxu0 %v330_v7  ;;  %v275_v29 = vld [vmem:[%s426_s6] ss:$0 sm:$0xff] }
   0x8   :  { %302 = vmatpush3.bf16.msra.mxu1 %v327_v4  ;;  %313 = vmatprep.subr.bf16.mxu0 %v334_v0 }
   0x9   :  { %303 = vmatprep.subr.bf16.mxu1 %v334_v0 }
   0xb   :  { %314 = vmatpush3.bf16.msra.mxu0 %v331_v8 }
   0xc   :  { %304 = vmatpush3.bf16.msra.mxu1 %v328_v5  ;;  %315 = vmatprep.subr.bf16.mxu0 %v334_v0 }
   0xd   :  { %305 = vmatprep.subr.bf16.mxu1 %v334_v0 }
   0xf   :  { %316 = vmatpush3.bf16.msra.mxu0 %v332_v18 }
  0x10   :  { %306 = vmatpush3.bf16.msra.mxu1 %v329_v6  ;;  %317 = vmatprep.subr.bf16.mxu0 %v334_v0 }
  0x13   :  { %318 = vmatpush3.bf16.msra.mxu0 %v333_v19 }
  0xd9   :  { %v81_v10 = vpop.f32.mrb[0].mxu0 }
  0xda   :  { %v82_v11 = vadd.f32 %v266_v9, %v81_v10  ;;  %v297_v12 = vpop.f32.mrb[1].mxu0 }
  0xdb   :  { %v84_v13 = vpop.f32.mrb[2].mxu0 }
  0xdc   :  { %vm87_vm2 = vcmp.ge.f32.partialorder %v82_v11, 0.0  ;;  %v88_v14 = vmul.f32 0.01, %v82_v11  ;;  %v298_v15 = vpop.f32.mrb[3].mxu0 }
  0xde   :  { %v89_v16 = vsel %vm87_vm2, %v82_v11, %v88_v14 }
  0xdf   :  { %v90_v17 = vpack.c.bf16 %v89_v16, %v89_v16 }
  0xe1   :  { %308 = vmatmul.mubr.msk.bf16.vlgmr.msra.gmra.mrb[0].mxu1 %vm130_vm3, %v90_v17 }
 0x1b4   :  { %v168_v21 = vpop.f32.mrb[0].mxu1 }
 0x1b5   :  { %v169_v22 = vadd.f32 %v269_v20, %v168_v21  ;;  %v309_v23 = vpop.f32.mrb[1].mxu1 }
 0x1b6   :  { %v171_v24 = vpop.f32.mrb[2].mxu1 }
 0x1b7   :  { %vm174_vm4 = vcmp.ge.f32.partialorder %v169_v22, 0.0  ;;  %v175_v25 = vmul.f32 0.01, %v169_v22  ;;  %v310_v26 = vpop.f32.mrb[3].mxu1 }
 0x1b9   :  { %v176_v27 = vsel %vm174_vm4, %v169_v22, %v175_v25 }
 0x1ba   :  { %v177_v28 = vpack.c.bf16 %v176_v27, %v176_v27 }
 0x1bc   :  { %320 = vmatmul.mubr.msk.bf16.vlgmr.msra.gmra.mrb[4].mxu0 %vm130_vm3, %v177_v28 }
 0x28f   :  { %v254_v30 = vpop.f32.mrb[4].mxu0 }
 0x290   :  { %v255_v31 = vadd.f32 %v275_v29, %v254_v30  ;;  %v321_v32 = vpop.f32.mrb[5].mxu0 }
 0x291   :  { %v257_v33 = vpop.f32.mrb[6].mxu0 }
 0x292   :  { %261 = vst.msk [vmem:[%s427_s7] sm:$0xff] %vm260_vm5, %v255_v31  ;;  %v322_v34 = vpop.f32.mrb[7].mxu0 }

</bundles_post_ra>
